<compile_context>
chip_gen: v7x
topology: tpu7x:2x2x1
jax: 0.10.0
libtpu: 0.0.40
codegen_flags: <defaults>
</compile_context>

<pallas_src>
import functools

import jax
import jax.numpy as jnp
from jax.experimental import pallas as pl
from jax.experimental.pallas import tpu as pltpu


def mlp_kernel(x_ref, w1t_ref, b1_ref, w2t_ref, b2_ref, o_ref, *, tc):
    """Processes one (tb, 2) batch tile in fused `tc`-row chunks.

    x_ref  : (tb, 2)      input rows (native PyTorch batch-major layout)
    w1t_ref: (2, 128)     fc1.weight^T  (hidden units along lanes)
    b1_ref : (1, 128)     fc1.bias as a row vector (sublane-broadcast)
    w2t_ref: (128, 2)     fc2.weight^T
    b2_ref : (1, 2)       fc2.bias as a row vector
    o_ref  : (tb, 2)      output rows
    """
    n_chunks = x_ref.shape[0] // tc

    # Tiny resident weights: load once per tile, hoisted out of the chunk loop.
    w1_r0 = w1t_ref[0:1, :]      # (1, 128) == fc1.weight[:, 0]
    w1_r1 = w1t_ref[1:2, :]      # (1, 128) == fc1.weight[:, 1]
    b1 = b1_ref[...]             # (1, 128)
    w2t = w2t_ref[...]           # (128, 2)
    b2 = b2_ref[...]             # (1, 2)

    # Fused layer1 -> ReLU -> layer2 per tc-row chunk: bounds the live range of
    # the (tc, 128) hidden activation so it never materializes as a full
    # (tb, 128) VMEM round-trip.
    @pl.loop(0, n_chunks)
    def _(c):
        off = pl.multiple_of(c * tc, tc)
        xc = x_ref[pl.ds(off, tc), :]                                   # (tc, 2)
        # Layer 1 (K=2) on the VPU: two broadcast FMAs + bias, then ReLU.
        h = jnp.maximum(xc[:, 0:1] * w1_r0 + xc[:, 1:2] * w1_r1 + b1,
                        0.0)                                            # (tc, 128)
        # Layer 2 on the MXU: full K=128, f32 accumulation, consumed while hot.
        y = jnp.dot(h, w2t, preferred_element_type=jnp.float32) + b2    # (tc, 2)
        o_ref[pl.ds(off, tc), :] = y.astype(o_ref.dtype)


def shallow_model_forward(x, w1, b1, w2, b2, *, tb=8192, tc=512):
    """x: (B, 2) f32.  PyTorch layout: w1 (128, 2), b1 (128,), w2 (2, 128), b2 (2,).

    tb = batch rows per grid step (sweep 4096/8192/16384 for very large B),
    tc = fused layer1->ReLU->layer2 chunk size inside a tile.
    """
    B, d_in = x.shape
    d_h = w1.shape[0]
    d_out = w2.shape[0]
    assert d_in == 2, "kernel is specialized for the 2-feature input of create_shallow_model"
    assert w1.shape == (d_h, d_in) and w2.shape == (d_out, d_h)
    assert tc % 8 == 0 and tb % tc == 0, (
        "tc must be a multiple of the 8-row sublane granule and divide tb")

    # Effective tile sizes: large tile for large B (amortizes per-step pipeline
    # overhead), shrunk for small B so a single block does not burn thousands of
    # padded rows of compute.
    if B <= tc:
        tc_eff = max(8, pl.cdiv(B, 8) * 8)
        tb_eff = tc_eff
    else:
        tc_eff = tc
        tb_eff = min(tb, pl.cdiv(B, tc) * tc)
    grid = (pl.cdiv(B, tb_eff),)   # partial last block: padded reads, masked writes

    # Weight-side glue only (~1 KiB total); no activation pad / transpose passes.
    w1t = jnp.transpose(w1)            # (2, 128)   hidden along lanes
    w2t = jnp.transpose(w2)            # (128, 2)
    b1r = b1.reshape(1, d_h)
    b2r = b2.reshape(1, d_out)

    cost = pl.CostEstimate(
        flops=2 * B * d_in * d_h + 2 * B * d_h * d_out,
        transcendentals=0,
        bytes_accessed=4 * (B * (d_in + d_out) + w1.size + b1.size + w2.size + b2.size),
    )

    return pl.pallas_call(
        functools.partial(mlp_kernel, tc=tc_eff),
        out_shape=jax.ShapeDtypeStruct((B, d_out), x.dtype),
        grid=grid,
        in_specs=[
            pl.BlockSpec((tb_eff, d_in), lambda i: (i, 0)),   # x tile, pipelined
            pl.BlockSpec((d_in, d_h), lambda i: (0, 0)),      # w1^T resident
            pl.BlockSpec((1, d_h), lambda i: (0, 0)),         # b1 resident
            pl.BlockSpec((d_h, d_out), lambda i: (0, 0)),     # w2^T resident
            pl.BlockSpec((1, d_out), lambda i: (0, 0)),       # b2 resident
        ],
        out_specs=pl.BlockSpec((tb_eff, d_out), lambda i: (i, 0)),
        compiler_params=pltpu.CompilerParams(
            dimension_semantics=("parallel",)),               # shard tiles across TCs
        cost_estimate=cost,
    )(x, w1t, b1r, w2t, b2r)


def init_params(key):
    """Deterministic init matching nn.Linear shapes (Kaiming-uniform-ish bounds)."""
    k1, k2, k3, k4 = jax.random.split(key, 4)
    bound1 = 1.0 / (2.0 ** 0.5)     # fan_in = 2
    bound2 = 1.0 / (128.0 ** 0.5)   # fan_in = 128
    w1 = jax.random.uniform(k1, (128, 2), jnp.float32, -bound1, bound1)
    b1 = jax.random.uniform(k2, (128,), jnp.float32, -bound1, bound1)
    w2 = jax.random.uniform(k3, (2, 128), jnp.float32, -bound2, bound2)
    b2 = jax.random.uniform(k4, (2,), jnp.float32, -bound2, bound2)
    return w1, b1, w2, b2


if __name__ == "__main__":
    key = jax.random.PRNGKey(0)
    k_x, k_p, k_x2 = jax.random.split(key, 3)
    w1, b1, w2, b2 = init_params(k_p)

    def ref_forward(x):
        # Same math as the PyTorch forward.
        return jnp.maximum(x @ w1.T + b1, 0.0) @ w2.T + b2

    # Small smoke test: single block that exactly covers the batch.
    x_small = jax.random.normal(k_x, (8, 2), jnp.float32)
    out_small = jax.block_until_ready(shallow_model_forward(x_small, w1, b1, w2, b2))
    assert out_small.shape == (8, 2)
    assert jnp.allclose(out_small, ref_forward(x_small), atol=1e-5, rtol=1e-5)

    # Non-divisible batch: exercises the multi-step grid, the fused chunk loop,
    # resident weights across steps, and the masked overhang of the last block.
    x_big = jax.random.normal(k_x2, (1003, 2), jnp.float32)
    out_big = jax.block_until_ready(
        shallow_model_forward(x_big, w1, b1, w2, b2, tb=512, tc=128))
    assert out_big.shape == (1003, 2)
    assert jnp.allclose(out_big, ref_forward(x_big), atol=1e-5, rtol=1e-5)

    print("KERNEL_OK")
</pallas_src>

<mosaic_0001>
module attributes {stable_mosaic.version = 11 : i64} {
  func.func @mlp_kernel(%arg0: i32, %arg1: memref<8x2xf32, #tpu.memory_space<vmem>>, %arg2: memref<2x128xf32, #tpu.memory_space<vmem>>, %arg3: memref<1x128xf32, #tpu.memory_space<vmem>>, %arg4: memref<128x2xf32, #tpu.memory_space<vmem>>, %arg5: memref<1x2xf32, #tpu.memory_space<vmem>>, %arg6: memref<8x2xf32, #tpu.memory_space<vmem>>) attributes {dimension_semantics = [#tpu.dimension_semantics<parallel>], iteration_bounds = array<i64: 1>, scalar_prefetch = 0 : i64, scratch_operands = 0 : i64, tpu.core_type = #tpu.core_type<tc>, window_params = [{transform_indices = @transform_0, window_bounds = array<i64: 8, 2>}, {pipeline_mode = #tpu.pipeline_mode<synchronous>, transform_indices = @transform_1, window_bounds = array<i64: 2, 128>}, {pipeline_mode = #tpu.pipeline_mode<synchronous>, transform_indices = @transform_2, window_bounds = array<i64: 1, 128>}, {pipeline_mode = #tpu.pipeline_mode<synchronous>, transform_indices = @transform_3, window_bounds = array<i64: 128, 2>}, {pipeline_mode = #tpu.pipeline_mode<synchronous>, transform_indices = @transform_4, window_bounds = array<i64: 1, 2>}, {transform_indices = @transform_5, window_bounds = array<i64: 8, 2>}]} {
    %c0 = arith.constant 0 : index
    %c0_0 = arith.constant 0 : index
    %0 = vector.load %arg2[%c0, %c0_0] : memref<2x128xf32, #tpu.memory_space<vmem>>, vector<1x128xf32>
    %c1 = arith.constant 1 : index
    %c0_1 = arith.constant 0 : index
    %1 = vector.load %arg2[%c1, %c0_1] : memref<2x128xf32, #tpu.memory_space<vmem>>, vector<1x128xf32>
    %c0_2 = arith.constant 0 : index
    %c0_3 = arith.constant 0 : index
    %2 = vector.load %arg3[%c0_2, %c0_3] : memref<1x128xf32, #tpu.memory_space<vmem>>, vector<1x128xf32>
    %c0_4 = arith.constant 0 : index
    %c0_5 = arith.constant 0 : index
    %3 = vector.load %arg4[%c0_4, %c0_5] : memref<128x2xf32, #tpu.memory_space<vmem>>, vector<128x2xf32>
    %c0_6 = arith.constant 0 : index
    %c0_7 = arith.constant 0 : index
    %4 = vector.load %arg5[%c0_6, %c0_7] : memref<1x2xf32, #tpu.memory_space<vmem>>, vector<1x2xf32>
    %c0_i32 = arith.constant 0 : i32
    %c1_i32 = arith.constant 1 : i32
    %5 = arith.muli %c0_i32, %c1_i32 : i32
    %c0_i32_8 = arith.constant 0 : i32
    %6 = arith.addi %c0_i32_8, %5 : i32
    %c8_i32 = arith.constant 8 : i32
    %7 = arith.muli %6, %c8_i32 : i32
    %8 = tpu.assume_multiple %7, 8 : i32
    %9 = arith.index_cast %8 : i32 to index
    %c0_9 = arith.constant 0 : index
    %10 = vector.load %arg1[%9, %c0_9] : memref<8x2xf32, #tpu.memory_space<vmem>>, vector<8x2xf32>
    %11 = vector.extract_strided_slice %10 {offsets = [0, 0], sizes = [8, 1], strides = [1, 1]} : vector<8x2xf32> to vector<8x1xf32>
    %12 = vector.broadcast %11 : vector<8x1xf32> to vector<8x128xf32>
    %13 = vector.broadcast %0 : vector<1x128xf32> to vector<8x128xf32>
    %14 = arith.mulf %12, %13 : vector<8x128xf32>
    %15 = vector.extract_strided_slice %10 {offsets = [0, 1], sizes = [8, 1], strides = [1, 1]} : vector<8x2xf32> to vector<8x1xf32>
    %16 = vector.broadcast %15 : vector<8x1xf32> to vector<8x128xf32>
    %17 = vector.broadcast %1 : vector<1x128xf32> to vector<8x128xf32>
    %18 = arith.mulf %16, %17 : vector<8x128xf32>
    %19 = arith.addf %14, %18 : vector<8x128xf32>
    %20 = vector.broadcast %2 : vector<1x128xf32> to vector<8x128xf32>
    %21 = arith.addf %19, %20 : vector<8x128xf32>
    %cst = arith.constant 0.000000e+00 : f32
    %22 = vector.broadcast %cst : f32 to vector<8x128xf32>
    %23 = arith.maximumf %21, %22 : vector<8x128xf32>
    %cst_10 = arith.constant dense<0.000000e+00> : vector<8x2xf32>
    %24 = tpu.matmul %23, %3, %cst_10 {dimension_numbers = #tpu.dot_dimension_numbers<[1], [0], [0], [1], [0, 0, 1, 1], [], []>} : vector<8x128xf32>, vector<128x2xf32>, vector<8x2xf32> -> vector<8x2xf32>
    %25 = vector.broadcast %4 : vector<1x2xf32> to vector<8x2xf32>
    %26 = arith.addf %24, %25 : vector<8x2xf32>
    %27 = arith.index_cast %8 : i32 to index
    %c0_11 = arith.constant 0 : index
    %28 = vector.load %arg6[%27, %c0_11] : memref<8x2xf32, #tpu.memory_space<vmem>>, vector<8x2xf32>
    tpu.vector_store %arg6[%27, %c0_11], %26 {strides = array<i32>} : memref<8x2xf32, #tpu.memory_space<vmem>>, vector<8x2xf32>,
    %c1_i32_12 = arith.constant 1 : i32
    return
  }
  func.func @transform_0(%arg0: i32) -> (i32, i32) {
    %c0_i32 = arith.constant 0 : i32
    %c0_i32_0 = arith.constant 0 : i32
    return %arg0, %c0_i32 : i32, i32
  }
  func.func @transform_1(%arg0: i32) -> (i32, i32) {
    %c0_i32 = arith.constant 0 : i32
    %c0_i32_0 = arith.constant 0 : i32
    %c0_i32_1 = arith.constant 0 : i32
    return %c0_i32, %c0_i32_0 : i32, i32
  }
  func.func @transform_2(%arg0: i32) -> (i32, i32) {
    %c0_i32 = arith.constant 0 : i32
    %c0_i32_0 = arith.constant 0 : i32
    %c0_i32_1 = arith.constant 0 : i32
    return %c0_i32, %c0_i32_0 : i32, i32
  }
  func.func @transform_3(%arg0: i32) -> (i32, i32) {
    %c0_i32 = arith.constant 0 : i32
    %c0_i32_0 = arith.constant 0 : i32
    %c0_i32_1 = arith.constant 0 : i32
    return %c0_i32, %c0_i32_0 : i32, i32
  }
  func.func @transform_4(%arg0: i32) -> (i32, i32) {
    %c0_i32 = arith.constant 0 : i32
    %c0_i32_0 = arith.constant 0 : i32
    %c0_i32_1 = arith.constant 0 : i32
    return %c0_i32, %c0_i32_0 : i32, i32
  }
  func.func @transform_5(%arg0: i32) -> (i32, i32) {
    %c0_i32 = arith.constant 0 : i32
    %c0_i32_0 = arith.constant 0 : i32
    return %arg0, %c0_i32 : i32, i32
  }
}

</mosaic_0001>

<bundles_post_ra>
// kernel: tpu_custom_call.1
= control target key start
LH: loop header
LB: loop body
LE: loop exit
PB: predicated region body
PF: predicated region fallthrough
CT: control target
= control target key end

     0   :  { %v238_v0 = vmov 0   ;;  %v239_v2 = vmov 0.0|0.0   ;;  %v240_v11 = vmov 1   ;;  %vm241_vm0 = vmmov 0   ;;  %s339_s0 = inlined_call_operand.vmem [shape: f32[8,2], index: 0, kind: input, shape index: {}]   ;;  %s340_s3 = inlined_call_operand.vmem [shape: f32[128,2], index: 3, kind: input, shape index: {}]   ;;  %s341_s1 = inlined_call_operand.vmem [shape: f32[2,128], index: 1, kind: input, shape index: {}]   ;;  %s342_s2 = inlined_call_operand.vmem [shape: f32[1,128], index: 2, kind: input, shape index: {}]   ;;  %s343_s4 = inlined_call_operand.vmem [shape: f32[1,2], index: 4, kind: input, shape index: {}]   ;;  %s344_s5 = inlined_call_operand.vmem [shape: f32[8,2], index: 5, kind: output, shape index: {}]  }
   0x1   :  { %236 = vset.pattern.permute.xlu0 %v238_v0  ;;  %v40_v1 = vld [vmem:[%s339_s0] sm:$0xff]  ;;  %207 = vmatprep.subr.bf16.mxu0 %v239_v2  ;;  %v24_v4 = vld [vmem:[%s340_s3 + $0x8] sm:$0xff]  ;;  %v25_v6 = vld [vmem:[%s340_s3 + $0x10] sm:$0xff]  ;;  %v242_v15 = vmov 0.0   ;;  %vm145_vm1 = vcmask 15360  }
   0x2   :  { %v23_v3 = vld [vmem:[%s340_s3] sm:$0xff]  ;;  %43 = vperm.xlu0 %236, %v40_v1   ;;  %v26_v7 = vld [vmem:[%s340_s3 + $0x18] sm:$0xff]  ;;  %v28_v10 = vld [vmem:[%s340_s3 + $0x28] sm:$0xff]  ;;  %204 = vmatprep.mubr.msk.f32.mxu0 %vm241_vm0, %v242_v15 }
   0x3   :  { %v208_v5 = vpack.c.bf16 %v24_v4, %v23_v3  ;;  %v211_v8 = vpack.c.bf16 %v26_v7, %v25_v6  ;;  %v27_v9 = vld [vmem:[%s340_s3 + $0x20] sm:$0xff]  ;;  %v29_v13 = vld [vmem:[%s340_s3 + $0x30] sm:$0xff]  ;;  %v30_v14 = vld [vmem:[%s340_s3 + $0x38] sm:$0xff] }
   0x4   :  { %v214_v12 = vpack.c.bf16 %v28_v10, %v27_v9  ;;  %v217_v16 = vpack.c.bf16 %v30_v14, %v29_v13  ;;  %v31_v17 = vld [vmem:[%s340_s3 + $0x40] sm:$0xff]  ;;  %v32_v18 = vld [vmem:[%s340_s3 + $0x48] sm:$0xff]  ;;  %v33_v20 = vld [vmem:[%s340_s3 + $0x50] sm:$0xff] }
   0x5   :  { %209 = vmatpush3.bf16.msra.mxu0 %v208_v5  ;;  %v220_v19 = vpack.c.bf16 %v32_v18, %v31_v17  ;;  %v34_v21 = vld [vmem:[%s340_s3 + $0x58] sm:$0xff]  ;;  %v35_v23 = vld [vmem:[%s340_s3 + $0x60] sm:$0xff]  ;;  %v36_v24 = vld [vmem:[%s340_s3 + $0x68] sm:$0xff] }
   0x6   :  { %210 = vmatprep.subr.bf16.mxu0 %v239_v2  ;;  %237 = vset.pattern.permute.xlu0 %v240_v11  ;;  %v223_v22 = vpack.c.bf16 %v34_v21, %v33_v20  ;;  %v226_v25 = vpack.c.bf16 %v36_v24, %v35_v23  ;;  %v37_v26 = vld [vmem:[%s340_s3 + $0x70] sm:$0xff]  ;;  %v38_v27 = vld [vmem:[%s340_s3 + $0x78] sm:$0xff]  ;;  %v151_v30 = vld [vmem:[%s341_s1] ss:$0 sm:$0xff] }
   0x7   :  { %52 = vperm.xlu0 %237, %v40_v1   ;;  %v229_v28 = vpack.c.bf16 %v38_v27, %v37_v26  ;;  %v152_v31 = vld [vmem:[%s341_s1 + $0x1] ss:$0 sm:$0xff]  ;;  %v153_v35 = vld [vmem:[%s342_s2] ss:$0 sm:$0xff] }
   0x8   :  { %v154_v39 = vld [vmem:[%s343_s4] ss:$0 sm:$0xff] }
   0x9   :  { %212 = vmatpush3.bf16.msra.mxu0 %v211_v8 }
   0xa   :  { %213 = vmatprep.subr.bf16.mxu0 %v239_v2 }
   0xd   :  { %215 = vmatpush3.bf16.msra.mxu0 %v214_v12 }
   0xe   :  { %216 = vmatprep.subr.bf16.mxu0 %v239_v2 }
  0x11   :  { %218 = vmatpush3.bf16.msra.mxu0 %v217_v16 }
  0x12   :  { %219 = vmatprep.subr.bf16.mxu0 %v239_v2 }
  0x15   :  { %221 = vmatpush3.bf16.msra.mxu0 %v220_v19 }
  0x16   :  { %222 = vmatprep.subr.bf16.mxu0 %v239_v2 }
  0x19   :  { %224 = vmatpush3.bf16.msra.mxu0 %v223_v22 }
  0x1a   :  { %225 = vmatprep.subr.bf16.mxu0 %v239_v2 }
  0x1d   :  { %227 = vmatpush3.bf16.msra.mxu0 %v226_v25 }
  0x1e   :  { %228 = vmatprep.subr.bf16.mxu0 %v239_v2 }
  0x21   :  { %230 = vmatpush3.bf16.msra.mxu0 %v229_v28 }
  0x81   :  { %v44_v29 = vpop.permute.xlu0 %43 }
  0x82   :  { %v50_v33 = vmul.f32 %v151_v30, %v44_v29 }
  0x86   :  { %v53_v32 = vpop.permute.xlu0 %52 }
  0x87   :  { %v59_v34 = vmul.f32 %v152_v31, %v53_v32 }
  0x89   :  { %v60_v36 = vadd.f32 %v59_v34, %v50_v33 }
  0x8b   :  { %v67_v37 = vadd.f32 %v153_v35, %v60_v36 }
  0x8d   :  { %v68_v38 = vmax.f32 %v67_v37, 0.0 }
  0x8f   :  { %205 = vmatmul.mubr.f32.vlgmr.msra.gmra.mrb[0].mxu0 %v68_v38 }
 0x162   :  { %v141_v40 = vpop.f32.mrb[0].mxu0 }
 0x163   :  { %v142_v41 = vadd.f32 %v154_v39, %v141_v40  ;;  %v206_v42 = vpop.f32.mrb[1].mxu0 }
 0x165   :  { %146 = vst.msk [vmem:[%s344_s5] sm:$0xff] %vm145_vm1, %v142_v41 }

</bundles_post_ra>
